<compile_context>
chip_gen: v7x
topology: tpu7x:2x2x1
jax: 0.10.0
libtpu: 0.0.40
codegen_flags: <defaults>
</compile_context>

<pallas_src>
import functools

import jax
import jax.numpy as jnp
from jax.experimental import pallas as pl
from jax.experimental.pallas import tpu as pltpu

_BN_EPS = 1e-5
_H1, _H2 = 400, 300          # logical hidden widths (PyTorch module)
_H1P, _H2P = 512, 384        # lane-padded hidden widths (multiples of 128)
_BATCH_TILE = 256            # batch tile for the gridded (no-BN) path


def _round_up(n, m):
    return ((n + m - 1) // m) * m


def _critic_kernel(x_ref, w1_ref, w2_ref, vec_ref, out_ref, *, use_bn):
    """One batch tile: x @ W1 -> (BN) -> relu -> @ W2 -> (BN) -> relu -> w3."""
    h2p = w2_ref.shape[1]      # 384

    # ---- unpack the (8, h1p) f32 vector slab (static slices, hoisted) ----
    b1 = vec_ref[0:1, :]              # (1, h1p)
    g1 = vec_ref[1:2, :]
    be1 = vec_ref[2:3, :]
    b2 = vec_ref[3:4, 0:h2p]          # (1, h2p)
    g2 = vec_ref[4:5, 0:h2p]
    be2 = vec_ref[5:6, 0:h2p]
    w3_row = vec_ref[6:7, 0:h2p]      # (1, h2p)
    b3 = vec_ref[7:8, 0:1]            # (1, 1)

    w1 = w1_ref[...]
    w2 = w2_ref[...]
    mm_dtype = w1.dtype               # bf16 (perf default) or f32 (parity)

    def mm(x, w):
        # Only the MXU operands are cast; accumulation and all VPU math is f32.
        return jnp.dot(x.astype(mm_dtype), w, preferred_element_type=jnp.float32)

    def bn(h, g, b):
        mean = jnp.mean(h, axis=0, keepdims=True)
        centered = h - mean
        var = jnp.mean(centered * centered, axis=0, keepdims=True)
        return centered * jax.lax.rsqrt(var + _BN_EPS) * g + b

    # ---- linear1 (single matmul; concat done in the wrapper) ----
    h = mm(x_ref[...], w1) + b1
    if use_bn:
        h = bn(h, g1, be1)
    h = jnp.maximum(h, 0.0)

    # ---- linear2 ----
    h = mm(h, w2) + b2
    if use_bn:
        h = bn(h, g2, be2)
    h = jnp.maximum(h, 0.0)

    # ---- linear3 (N=1): VPU multiply + XLU lane reduce, not an MXU matmul ----
    out_ref[...] = jnp.sum(h * w3_row, axis=1, keepdims=True) + b3


def init_critic_params(key, state_dim, action_dim):
    """PyTorch-style U(-1/sqrt(fan_in), 1/sqrt(fan_in)) init, logical shapes."""
    dims = [(state_dim + action_dim, _H1), (_H1, _H2), (_H2, 1)]
    params = {}
    for i, (fan_in, fan_out) in enumerate(dims, start=1):
        key, kw, kb = jax.random.split(key, 3)
        bound = 1.0 / jnp.sqrt(jnp.float32(fan_in))
        params[f"w{i}"] = jax.random.uniform(
            kw, (fan_in, fan_out), jnp.float32, -bound, bound)
        params[f"b{i}"] = jax.random.uniform(
            kb, (1, fan_out), jnp.float32, -bound, bound)
    # BatchNorm affine params (gamma=1, beta=0 default init)
    params["g1"] = jnp.ones((1, _H1), jnp.float32)
    params["be1"] = jnp.zeros((1, _H1), jnp.float32)
    params["g2"] = jnp.ones((1, _H2), jnp.float32)
    params["be2"] = jnp.zeros((1, _H2), jnp.float32)
    return params


def pack_critic_params(params, state_dim, action_dim, *, param_dtype=jnp.bfloat16):
    """Zero-pad hidden dims to (512, 384), pack vectors into one f32 slab.

    Matmul weights are stored in `param_dtype` (bf16 default: halves weight
    HBM bytes and feeds the MXU natively).  The vector slab (biases, BN
    gamma/beta, w3 row, b3) stays f32: it is tiny and is consumed by VPU/EUP
    math which must stay f32 (esp. on v5e).  Padding rules: weight rows/cols,
    biases, gamma and beta are padded with zeros (gamma pad = 0), so padded
    columns are exactly zero after BN/ReLU and contribute nothing downstream.
    """
    f32 = jnp.float32
    d_in = state_dim + action_dim
    w1 = jnp.zeros((d_in, _H1P), f32).at[:, :_H1].set(params["w1"]).astype(param_dtype)
    w2 = jnp.zeros((_H1P, _H2P), f32).at[:_H1, :_H2].set(params["w2"]).astype(param_dtype)
    vec = jnp.zeros((8, _H1P), f32)
    vec = vec.at[0, :_H1].set(params["b1"][0])
    vec = vec.at[1, :_H1].set(params["g1"][0])
    vec = vec.at[2, :_H1].set(params["be1"][0])
    vec = vec.at[3, :_H2].set(params["b2"][0])
    vec = vec.at[4, :_H2].set(params["g2"][0])
    vec = vec.at[5, :_H2].set(params["be2"][0])
    vec = vec.at[6, :_H2].set(params["w3"][:, 0])
    vec = vec.at[7, 0].set(params["b3"][0, 0])
    return {"w1": w1, "w2": w2, "vec": vec}


def critic_forward(state, action, packed, mode, *, batch_tile=_BATCH_TILE):
    """Pallas-backed equivalent of Critic.forward(state, action, mode)."""
    use_bn = mode in ("bn", "bntn")
    B = state.shape[0]
    # Wrapper-side concat: cheap XLA layout plumbing, enables one layer-1 matmul.
    x = jnp.concatenate([state.astype(jnp.float32), action.astype(jnp.float32)], axis=1)
    d_in = x.shape[1]
    w1, w2, vec = packed["w1"], packed["w2"], packed["vec"]

    weight_bytes = int(w1.size * w1.dtype.itemsize + w2.size * w2.dtype.itemsize
                       + vec.size * vec.dtype.itemsize)
    cost = pl.CostEstimate(
        flops=2 * B * (d_in * _H1P + _H1P * _H2P + _H2P),
        transcendentals=(_H1P + _H2P) if use_bn else 0,
        bytes_accessed=weight_bytes + B * (d_in + 1) * 4,
    )

    if use_bn:
        # Training-mode BN couples all rows -> whole batch in one block, no grid.
        # Explicit VMEM limit with headroom, capped under v7x's 64 MiB physical
        # VMEM; batches that exceed the cap fail loudly at compile time.
        act_bytes = B * 4 * (d_in + 3 * (_H1P + _H2P) + 2)
        vmem_limit = min(max(weight_bytes + act_bytes + (8 << 20), 32 << 20), 56 << 20)
        fn = pl.pallas_call(
            functools.partial(_critic_kernel, use_bn=True),
            out_shape=jax.ShapeDtypeStruct((B, 1), jnp.float32),
            in_specs=[pl.BlockSpec(memory_space=pltpu.MemorySpace.VMEM)] * 4,
            out_specs=pl.BlockSpec(memory_space=pltpu.MemorySpace.VMEM),
            compiler_params=pltpu.CompilerParams(vmem_limit_bytes=vmem_limit),
            cost_estimate=cost,
        )
        return fn(x, w1, w2, vec)

    # Plain path: batch grid with VMEM-resident weights (constant index_map),
    # "parallel" batch axis so v7x's two TensorCores split the grid.
    tb = min(batch_tile, _round_up(B, 8))
    bp = _round_up(B, tb)
    if bp != B:
        x = jnp.pad(x, ((0, bp - B), (0, 0)))     # padded rows are independent junk
    fn = pl.pallas_call(
        functools.partial(_critic_kernel, use_bn=False),
        out_shape=jax.ShapeDtypeStruct((bp, 1), jnp.float32),
        grid=(bp // tb,),
        in_specs=[
            pl.BlockSpec((tb, d_in), lambda i: (i, 0)),     # batch-tiled activations
            pl.BlockSpec((d_in, _H1P), lambda i: (0, 0)),   # weights: constant block
            pl.BlockSpec((_H1P, _H2P), lambda i: (0, 0)),   #   -> VMEM-resident
            pl.BlockSpec((8, _H1P), lambda i: (0, 0)),
        ],
        out_specs=pl.BlockSpec((tb, 1), lambda i: (i, 0)),
        compiler_params=pltpu.CompilerParams(
            dimension_semantics=("parallel",),
            vmem_limit_bytes=32 << 20,
        ),
        cost_estimate=cost,
    )
    q = fn(x, w1, w2, vec)
    return q[:B] if bp != B else q


def _reference_forward(state, action, params, mode):
    """Pure-JAX reference (unpadded, logical shapes) for correctness check."""
    use_bn = mode in ("bn", "bntn")

    def bn(h, g, b):
        mean = jnp.mean(h, axis=0, keepdims=True)
        var = jnp.mean((h - mean) ** 2, axis=0, keepdims=True)
        return (h - mean) * jax.lax.rsqrt(var + _BN_EPS) * g + b

    x = jnp.concatenate([state, action], axis=1)
    h = x @ params["w1"] + params["b1"]
    if use_bn:
        h = bn(h, params["g1"], params["be1"])
    h = jnp.maximum(h, 0.0)
    h = h @ params["w2"] + params["b2"]
    if use_bn:
        h = bn(h, params["g2"], params["be2"])
    h = jnp.maximum(h, 0.0)
    return h @ params["w3"] + params["b3"]


if __name__ == "__main__":
    B, STATE_DIM, ACTION_DIM = 8, 24, 8

    key = jax.random.PRNGKey(0)
    key, ks, ka, kp = jax.random.split(key, 4)
    state = jax.random.normal(ks, (B, STATE_DIM), jnp.float32)
    action = jax.random.normal(ka, (B, ACTION_DIM), jnp.float32)
    params = init_critic_params(kp, STATE_DIM, ACTION_DIM)

    packed_f32 = pack_critic_params(params, STATE_DIM, ACTION_DIM,
                                    param_dtype=jnp.float32)   # parity path
    packed_bf16 = pack_critic_params(params, STATE_DIM, ACTION_DIM)  # perf default

    ok = True
    for mode in ("bn", "plain"):
        q_ref = _reference_forward(state, action, params, mode)

        # f32 weights / f32 MXU inputs: exact parity vs. the reference.
        q = jax.block_until_ready(critic_forward(state, action, packed_f32, mode))
        if q.shape != (B, 1) or not jnp.allclose(q, q_ref, atol=1e-4, rtol=1e-4):
            ok = False

        # bf16 weight storage + bf16 MXU operands (f32 accumulate): perf default,
        # checked at a bf16-appropriate tolerance.
        qb = jax.block_until_ready(critic_forward(state, action, packed_bf16, mode))
        if qb.shape != (B, 1) or not jnp.allclose(qb, q_ref, atol=1e-1, rtol=1e-1):
            ok = False

    if ok:
        print("KERNEL_OK")
</pallas_src>

<mosaic_0001>
module attributes {stable_mosaic.version = 11 : i64} {
  func.func @_critic_kernel(%arg0: memref<8x32xf32, #tpu.memory_space<vmem>>, %arg1: memref<32x512xf32, #tpu.memory_space<vmem>>, %arg2: memref<512x384xf32, #tpu.memory_space<vmem>>, %arg3: memref<8x512xf32, #tpu.memory_space<vmem>>, %arg4: memref<8x1xf32, #tpu.memory_space<vmem>>) attributes {dimension_semantics = [], scalar_prefetch = 0 : i64, scratch_operands = 0 : i64, tpu.core_type = #tpu.core_type<tc>} {
    %c0 = arith.constant 0 : index
    %c0_0 = arith.constant 0 : index
    %0 = vector.load %arg3[%c0, %c0_0] : memref<8x512xf32, #tpu.memory_space<vmem>>, vector<1x512xf32>
    %c1 = arith.constant 1 : index
    %c0_1 = arith.constant 0 : index
    %1 = vector.load %arg3[%c1, %c0_1] : memref<8x512xf32, #tpu.memory_space<vmem>>, vector<1x512xf32>
    %c2 = arith.constant 2 : index
    %c0_2 = arith.constant 0 : index
    %2 = vector.load %arg3[%c2, %c0_2] : memref<8x512xf32, #tpu.memory_space<vmem>>, vector<1x512xf32>
    %c3 = arith.constant 3 : index
    %c0_3 = arith.constant 0 : index
    %3 = vector.load %arg3[%c3, %c0_3] : memref<8x512xf32, #tpu.memory_space<vmem>>, vector<1x384xf32>
    %c4 = arith.constant 4 : index
    %c0_4 = arith.constant 0 : index
    %4 = vector.load %arg3[%c4, %c0_4] : memref<8x512xf32, #tpu.memory_space<vmem>>, vector<1x384xf32>
    %c5 = arith.constant 5 : index
    %c0_5 = arith.constant 0 : index
    %5 = vector.load %arg3[%c5, %c0_5] : memref<8x512xf32, #tpu.memory_space<vmem>>, vector<1x384xf32>
    %c6 = arith.constant 6 : index
    %c0_6 = arith.constant 0 : index
    %6 = vector.load %arg3[%c6, %c0_6] : memref<8x512xf32, #tpu.memory_space<vmem>>, vector<1x384xf32>
    %c7 = arith.constant 7 : index
    %c0_7 = arith.constant 0 : index
    %7 = vector.load %arg3[%c7, %c0_7] : memref<8x512xf32, #tpu.memory_space<vmem>>, vector<1x1xf32>
    %c0_8 = arith.constant 0 : index
    %c0_9 = arith.constant 0 : index
    %8 = vector.load %arg1[%c0_8, %c0_9] : memref<32x512xf32, #tpu.memory_space<vmem>>, vector<32x512xf32>
    %c0_10 = arith.constant 0 : index
    %c0_11 = arith.constant 0 : index
    %9 = vector.load %arg2[%c0_10, %c0_11] : memref<512x384xf32, #tpu.memory_space<vmem>>, vector<512x384xf32>
    %c0_12 = arith.constant 0 : index
    %c0_13 = arith.constant 0 : index
    %10 = vector.load %arg0[%c0_12, %c0_13] : memref<8x32xf32, #tpu.memory_space<vmem>>, vector<8x32xf32>
    %cst = arith.constant dense<0.000000e+00> : vector<8x512xf32>
    %11 = tpu.matmul %10, %8, %cst {dimension_numbers = #tpu.dot_dimension_numbers<[1], [0], [0], [1], [0, 0, 1, 1], [], []>} : vector<8x32xf32>, vector<32x512xf32>, vector<8x512xf32> -> vector<8x512xf32>
    %12 = vector.broadcast %0 : vector<1x512xf32> to vector<8x512xf32>
    %13 = arith.addf %11, %12 : vector<8x512xf32>
    %cst_14 = arith.constant dense<0.000000e+00> : vector<512xf32>
    %14 = vector.multi_reduction <add>, %13, %cst_14 [0] : vector<8x512xf32> to vector<512xf32>
    %15 = vector.shape_cast %14 : vector<512xf32> to vector<1x512xf32>
    %cst_15 = arith.constant 8.000000e+00 : f32
    %16 = vector.broadcast %cst_15 : f32 to vector<1x512xf32>
    %17 = arith.divf %15, %16 : vector<1x512xf32>
    %18 = vector.broadcast %17 : vector<1x512xf32> to vector<8x512xf32>
    %19 = arith.subf %13, %18 : vector<8x512xf32>
    %20 = arith.mulf %19, %19 : vector<8x512xf32>
    %cst_16 = arith.constant dense<0.000000e+00> : vector<512xf32>
    %21 = vector.multi_reduction <add>, %20, %cst_16 [0] : vector<8x512xf32> to vector<512xf32>
    %22 = vector.shape_cast %21 : vector<512xf32> to vector<1x512xf32>
    %cst_17 = arith.constant 8.000000e+00 : f32
    %23 = vector.broadcast %cst_17 : f32 to vector<1x512xf32>
    %24 = arith.divf %22, %23 : vector<1x512xf32>
    %cst_18 = arith.constant 9.99999974E-6 : f32
    %25 = vector.broadcast %cst_18 : f32 to vector<1x512xf32>
    %26 = arith.addf %24, %25 : vector<1x512xf32>
    %27 = math.rsqrt %26 : vector<1x512xf32>
    %28 = vector.broadcast %27 : vector<1x512xf32> to vector<8x512xf32>
    %29 = arith.mulf %19, %28 : vector<8x512xf32>
    %30 = vector.broadcast %1 : vector<1x512xf32> to vector<8x512xf32>
    %31 = arith.mulf %29, %30 : vector<8x512xf32>
    %32 = vector.broadcast %2 : vector<1x512xf32> to vector<8x512xf32>
    %33 = arith.addf %31, %32 : vector<8x512xf32>
    %cst_19 = arith.constant 0.000000e+00 : f32
    %34 = vector.broadcast %cst_19 : f32 to vector<8x512xf32>
    %35 = arith.maximumf %33, %34 : vector<8x512xf32>
    %cst_20 = arith.constant dense<0.000000e+00> : vector<8x384xf32>
    %36 = tpu.matmul %35, %9, %cst_20 {dimension_numbers = #tpu.dot_dimension_numbers<[1], [0], [0], [1], [0, 0, 1, 1], [], []>} : vector<8x512xf32>, vector<512x384xf32>, vector<8x384xf32> -> vector<8x384xf32>
    %37 = vector.broadcast %3 : vector<1x384xf32> to vector<8x384xf32>
    %38 = arith.addf %36, %37 : vector<8x384xf32>
    %cst_21 = arith.constant dense<0.000000e+00> : vector<384xf32>
    %39 = vector.multi_reduction <add>, %38, %cst_21 [0] : vector<8x384xf32> to vector<384xf32>
    %40 = vector.shape_cast %39 : vector<384xf32> to vector<1x384xf32>
    %cst_22 = arith.constant 8.000000e+00 : f32
    %41 = vector.broadcast %cst_22 : f32 to vector<1x384xf32>
    %42 = arith.divf %40, %41 : vector<1x384xf32>
    %43 = vector.broadcast %42 : vector<1x384xf32> to vector<8x384xf32>
    %44 = arith.subf %38, %43 : vector<8x384xf32>
    %45 = arith.mulf %44, %44 : vector<8x384xf32>
    %cst_23 = arith.constant dense<0.000000e+00> : vector<384xf32>
    %46 = vector.multi_reduction <add>, %45, %cst_23 [0] : vector<8x384xf32> to vector<384xf32>
    %47 = vector.shape_cast %46 : vector<384xf32> to vector<1x384xf32>
    %cst_24 = arith.constant 8.000000e+00 : f32
    %48 = vector.broadcast %cst_24 : f32 to vector<1x384xf32>
    %49 = arith.divf %47, %48 : vector<1x384xf32>
    %cst_25 = arith.constant 9.99999974E-6 : f32
    %50 = vector.broadcast %cst_25 : f32 to vector<1x384xf32>
    %51 = arith.addf %49, %50 : vector<1x384xf32>
    %52 = math.rsqrt %51 : vector<1x384xf32>
    %53 = vector.broadcast %52 : vector<1x384xf32> to vector<8x384xf32>
    %54 = arith.mulf %44, %53 : vector<8x384xf32>
    %55 = vector.broadcast %4 : vector<1x384xf32> to vector<8x384xf32>
    %56 = arith.mulf %54, %55 : vector<8x384xf32>
    %57 = vector.broadcast %5 : vector<1x384xf32> to vector<8x384xf32>
    %58 = arith.addf %56, %57 : vector<8x384xf32>
    %cst_26 = arith.constant 0.000000e+00 : f32
    %59 = vector.broadcast %cst_26 : f32 to vector<8x384xf32>
    %60 = arith.maximumf %58, %59 : vector<8x384xf32>
    %61 = vector.broadcast %6 : vector<1x384xf32> to vector<8x384xf32>
    %62 = arith.mulf %60, %61 : vector<8x384xf32>
    %cst_27 = arith.constant dense<0.000000e+00> : vector<8xf32>
    %63 = vector.multi_reduction <add>, %62, %cst_27 [1] : vector<8x384xf32> to vector<8xf32>
    %64 = vector.shape_cast %63 : vector<8xf32> to vector<8x1xf32>
    %65 = vector.broadcast %7 : vector<1x1xf32> to vector<8x1xf32>
    %66 = arith.addf %64, %65 : vector<8x1xf32>
    %c0_28 = arith.constant 0 : index
    %c0_29 = arith.constant 0 : index
    %67 = vector.load %arg4[%c0_28, %c0_29] : memref<8x1xf32, #tpu.memory_space<vmem>>, vector<8x1xf32>
    tpu.vector_store %arg4[%c0_28, %c0_29], %66 {strides = array<i32>} : memref<8x1xf32, #tpu.memory_space<vmem>>, vector<8x1xf32>,
    return
  }
}

</mosaic_0001>

<bundles_post_ra>
// kernel: tpu_custom_call.1
= control target key start
LH: loop header
LB: loop body
LE: loop exit
PB: predicated region body
PF: predicated region fallthrough
CT: control target
= control target key end

     0   :  { %9 = vsyncpa [#allocation3], 0  ;;  %s1563_s0 = inlined_call_operand.hbm [shape: f32[8,32], index: 0, kind: input, shape index: {}]   ;;  %s1564_s1 = inlined_call_operand.hbm [shape: f32[32,512], index: 1, kind: input, shape index: {}]   ;;  %s1565_s2 = inlined_call_operand.hbm [shape: f32[512,384], index: 2, kind: input, shape index: {}]   ;;  %s1566_s3 = inlined_call_operand.hbm [shape: f32[8,512], index: 3, kind: input, shape index: {}]   ;;  %s1567_s4 = inlined_call_operand.vmem [shape: f32[8,1], index: 4, kind: output, shape index: {}]  }
   0x1   :  { %10 = vsyncpa [#allocation5], 0 }
   0x2   :  { %11 = vsyncpa [#allocation8], 0  ;;  %s1419_s15 = smov [#allocation4]   ;;  %s1325_s19 = scalar_lea.hbm %s1564_s1, 2048 }
   0x3   :  { %s27_s16 = sshll.u32 %s1419_s15, 4  ;;  %p1326_p0 = scmp.ne.s32.totalorder %s1564_s1, %s1325_s19  ;;  %s28_s16 = int_to_ptr.vmem [resolvable:$true] %s27_s16 }
   0x4   :  { %p1329_p1 = scmp.lt.u32.totalorder %s1325_s19, %s1564_s1 }
   0x6   :  { %p1331_p2 = pnand %p1329_p1, %p1326_p0 }
   0x8   :  { %1334 = shalt.err (!%p1331_p2)
}
   0x9   :  { %s1335_s24 = scalar_lea.vmem %s28_s16, 2048  ;;  %p1340_p4 = scmp.lt.s32.totalorder %s28_s16, %s28_s16 }
   0xa   :  { %p1336_p3 = scmp.ne.s32.totalorder %s28_s16, %s1335_s24  ;;  %p1341_p5 = scmp.lt.s32.totalorder %s1335_s24, %s1335_s24 }
   0xc   :  { %p1342_p6 = por %p1341_p5, %p1340_p4 }
   0xe   :  { %p1343_p7 = pnand %p1342_p6, %p1336_p3 }
  0x10   :  { %1346 = shalt.err (!%p1343_p7)
}
  0x11   :  { %s1420_s25 = smov 512   ;;  %s1421_s26 = smov 32  }
  0x12   :  { %33 = dma.hbm_to_vmem [thread:$0]  %s1564_s1, 2048, %s28_s16, [#allocation5], %s1420_s25, %s1420_s25, %s1421_s26  }
  0x13   :  { %s1422_s29 = smov [#allocation2]   ;;  %s1423_s5 = smov [#allocation6]  }
  0x14   :  { %s18_s30 = sshll.u32 %s1422_s29, 4  ;;  %s39_s6 = sshll.u32 %s1423_s5, 4  ;;  %s19_s30 = int_to_ptr.vmem [resolvable:$true] %s18_s30  ;;  %s40_s6 = int_to_ptr.vmem [resolvable:$true] %s39_s6 }
  0x15   :  { %s1347_s9 = scalar_lea.hbm %s1563_s0, 128 }
  0x16   :  { %p1348_p8 = scmp.ne.s32.totalorder %s1563_s0, %s1347_s9  ;;  %p1351_p9 = scmp.lt.u32.totalorder %s1347_s9, %s1563_s0 }
  0x18   :  { %p1353_p10 = pnand %p1351_p9, %p1348_p8 }
  0x1a   :  { %1356 = shalt.err (!%p1353_p10)
}
  0x1b   :  { %s1357_s1 = scalar_lea.vmem %s19_s30, 128  ;;  %p1362_p12 = scmp.lt.s32.totalorder %s19_s30, %s19_s30 }
  0x1c   :  { %p1358_p11 = scmp.ne.s32.totalorder %s19_s30, %s1357_s1  ;;  %p1363_p13 = scmp.lt.s32.totalorder %s1357_s1, %s1357_s1 }
  0x1e   :  { %p1364_p0 = por %p1363_p13, %p1362_p12 }
  0x20   :  { %p1365_p1 = pnand %p1364_p0, %p1358_p11 }
  0x22   :  { %1368 = shalt.err (!%p1365_p1)
}
  0x23   :  { %21 = dma.hbm_to_vmem [thread:$0]  %s1563_s0, 128, %s19_s30, [#allocation3]  }
  0x24   :  { %s1369_s18 = scalar_lea.hbm %s1565_s2, 24576 }
  0x25   :  { %p1370_p2 = scmp.ne.s32.totalorder %s1565_s2, %s1369_s18  ;;  %p1373_p3 = scmp.lt.u32.totalorder %s1369_s18, %s1565_s2 }
  0x27   :  { %p1375_p4 = pnand %p1373_p3, %p1370_p2 }
  0x29   :  { %1378 = shalt.err (!%p1375_p4)
}
  0x2a   :  { %s1379_s23 = scalar_lea.vmem %s40_s6, 24576  ;;  %p1384_p6 = scmp.lt.s32.totalorder %s40_s6, %s40_s6 }
  0x2b   :  { %p1380_p5 = scmp.ne.s32.totalorder %s40_s6, %s1379_s23  ;;  %p1385_p7 = scmp.lt.s32.totalorder %s1379_s23, %s1379_s23 }
  0x2d   :  { %p1386_p8 = por %p1385_p7, %p1384_p6 }
  0x2f   :  { %p1387_p9 = pnand %p1386_p8, %p1380_p5 }
  0x31   :  { %1390 = shalt.err (!%p1387_p9)
}
  0x32   :  { %s1424_s0 = smov 384   ;;  %s1425_s24 = smov 24  }
  0x33   :  { %45 = dma.hbm_to_vmem [thread:$0]  %s1565_s2, 24576, %s40_s6, [#allocation5], %s1424_s0, %s1424_s0, %s1425_s24  }
  0x34   :  { %s1426_s27 = smov [#allocation7]   ;;  %s1391_s5 = scalar_lea.hbm %s1566_s3, 512 }
  0x35   :  { %s52_s28 = sshll.u32 %s1426_s27, 4  ;;  %p1392_p10 = scmp.ne.s32.totalorder %s1566_s3, %s1391_s5  ;;  %s53_s28 = int_to_ptr.vmem [resolvable:$true] %s52_s28 }
  0x36   :  { %p1395_p11 = scmp.lt.u32.totalorder %s1391_s5, %s1566_s3 }
  0x38   :  { %p1397_p12 = pnand %p1395_p11, %p1392_p10 }
  0x3a   :  { %1400 = shalt.err (!%p1397_p12)
}
  0x3b   :  { %s1401_s11 = scalar_lea.vmem %s53_s28, 512  ;;  %p1406_p0 = scmp.lt.s32.totalorder %s53_s28, %s53_s28 }
  0x3c   :  { %p1402_p13 = scmp.ne.s32.totalorder %s53_s28, %s1401_s11  ;;  %p1407_p1 = scmp.lt.s32.totalorder %s1401_s11, %s1401_s11 }
  0x3e   :  { %p1408_p2 = por %p1407_p1, %p1406_p0 }
  0x40   :  { %p1409_p3 = pnand %p1408_p2, %p1402_p13 }
  0x42   :  { %1412 = shalt.err (!%p1409_p3)
}
  0x43   :  { %55 = dma.hbm_to_vmem [thread:$0]  %s1566_s3, 512, %s53_s28, [#allocation8]  }
  0x44   :  { %1413 = dma.done.wait [#allocation3], 128  }
  0x45   :  { %1414 = vsyncadd [#allocation3], 4294967168 }
  0x46   :  { %1415 = dma.done.wait [#allocation5], 26624  }
  0x47   :  { %1416 = vsyncadd [#allocation5], 4294940672 }
  0x48   :  { %1417 = dma.done.wait [#allocation8], 512  }
  0x49   :  { %1418 = vsyncadd [#allocation8], 4294966784  ;;  %v1427_v0 = vmov 0.0   ;;  %v83_v1 = vld [vmem:[#allocation4 + $0x8] sm:$0xff]  ;;  %v82_v3 = vld [vmem:[#allocation4] sm:$0xff]  ;;  %vm312_vm0 = vcmask 261120  }
  0x4a   :  { %380 = vmatprep.mubr.f32.mxu1 %v1427_v0  ;;  %v87_v2 = vld [vmem:[#allocation4 + $0x28] sm:$0xff]  ;;  %v86_v5 = vld [vmem:[#allocation4 + $0x20] sm:$0xff]  ;;  %v85_v12 = vld [vmem:[#allocation4 + $0x18] sm:$0xff]  ;;  %vm1009_vm1 = vcmask 7168  }
  0x4b   :  { %v1090_v4 = vpack.c.bf16 %v87_v2, %v83_v1  ;;  %v91_v6 = vld [vmem:[#allocation4 + $0x48] sm:$0xff]  ;;  %v1092_v8 = vpack.c.bf16 %v86_v5, %v82_v3  ;;  %v90_v10 = vld [vmem:[#allocation4 + $0x40] sm:$0xff]  ;;  %v89_v13 = vld [vmem:[#allocation4 + $0x38] sm:$0xff] }
  0x4c   :  { %v95_v7 = vld [vmem:[#allocation4 + $0x68] sm:$0xff]  ;;  %v94_v11 = vld [vmem:[#allocation4 + $0x60] sm:$0xff]  ;;  %v84_v15 = vld [vmem:[#allocation4 + $0x10] sm:$0xff]  ;;  %v1098_v17 = vpack.c.bf16 %v89_v13, %v85_v12 }
  0x4d   :  { %v1094_v9 = vpack.c.bf16 %v95_v7, %v91_v6  ;;  %1091 = vmatprep.subr.bf16.mxu1 %v1090_v4  ;;  %v1096_v14 = vpack.c.bf16 %v94_v11, %v90_v10  ;;  %v88_v16 = vld [vmem:[#allocation4 + $0x30] sm:$0xff]  ;;  %v93_v18 = vld [vmem:[#allocation4 + $0x58] sm:$0xff]  ;;  %v99_v20 = vld [vmem:[#allocation6 + $0x8] sm:$0xff] }
  0x4e   :  { %1093 = vmatpush1.bf16.msra.mxu1 %v1092_v8  ;;  %v97_v19 = vld [vmem:[#allocation4 + $0x78] sm:$0xff]  ;;  %v102_v21 = vld [vmem:[#allocation6 + $0x20] sm:$0xff]  ;;  %v108_v27 = vld [vmem:[#allocation6 + $0x50] sm:$0xff]  ;;  %v1100_v30 = vpack.c.bf16 %v88_v16, %v84_v15 }
  0x4f   :  { %1095 = vmatprep.subr.bf16.mxu1 %v1094_v9  ;;  %v98_v22 = vld [vmem:[#allocation6] sm:$0xff]  ;;  %v101_v23 = vld [vmem:[#allocation6 + $0x18] sm:$0xff]  ;;  %v1106_v24 = vpack.c.bf16 %v102_v21, %v99_v20  ;;  %v104_v28 = vld [vmem:[#allocation6 + $0x30] sm:$0xff]  ;;  %v1102_v33 = vpack.c.bf16 %v97_v19, %v93_v18 }
  0x50   :  { %v1108_v25 = vpack.c.bf16 %v101_v23, %v98_v22  ;;  %v105_v26 = vld [vmem:[#allocation6 + $0x38] sm:$0xff]  ;;  %v107_v32 = vld [vmem:[#allocation6 + $0x48] sm:$0xff]  ;;  %v92_v34 = vld [vmem:[#allocation4 + $0x50] sm:$0xff] }
  0x51   :  { %v290_v29 = vld [vmem:[#allocation2] sm:$0xff]  ;;  %v1110_v31 = vpack.c.bf16 %v108_v27, %v105_v26  ;;  %v96_v35 = vld [vmem:[#allocation4 + $0x70] sm:$0xff]  ;;  %1107 = vmatprep.subr.bf16.mxu0 %v1106_v24  ;;  %v1112_v36 = vpack.c.bf16 %v107_v32, %v104_v28  ;;  %v111_v38 = vld [vmem:[#allocation6 + $0x68] sm:$0xff] }
  0x52   :  { %1097 = vmatpush1.bf16.msra.mxu1 %v1096_v14  ;;  %1109 = vmatpush1.bf16.msra.mxu0 %v1108_v25  ;;  %v1104_v37 = vpack.c.bf16 %v96_v35, %v92_v34  ;;  %v114_v39 = vld [vmem:[#allocation6 + $0x80] sm:$0xff]  ;;  %v113_v42 = vld [vmem:[#allocation6 + $0x78] sm:$0xff]  ;;  %v120_v45 = vld [vmem:[#allocation6 + $0xb0] sm:$0xff] }
  0x53   :  { %1099 = vmatprep.subr.bf16.mxu1 %v1098_v17  ;;  %1111 = vmatprep.subr.bf16.mxu0 %v1110_v31  ;;  %v1114_v40 = vpack.c.bf16 %v114_v39, %v111_v38  ;;  %v110_v41 = vld [vmem:[#allocation6 + $0x60] sm:$0xff]  ;;  %v117_v44 = vld [vmem:[#allocation6 + $0x98] sm:$0xff]  ;;  %v116_v47 = vld [vmem:[#allocation6 + $0x90] sm:$0xff] }
  0x54   :  { %v1116_v43 = vpack.c.bf16 %v113_v42, %v110_v41  ;;  %v1118_v46 = vpack.c.bf16 %v120_v45, %v117_v44  ;;  %v119_v48 = vld [vmem:[#allocation6 + $0xa8] sm:$0xff]  ;;  %v126_v51 = vld [vmem:[#allocation6 + $0xe0] sm:$0xff]  ;;  %v125_v54 = vld [vmem:[#allocation6 + $0xd8] sm:$0xff] }
  0x55   :  { %1018 = vmatmul.mubr.msk.f32.vlgmr.msra.gmra.mrb[0].mxu1 %vm312_vm0, %v290_v29  ;;  %v1120_v49 = vpack.c.bf16 %v119_v48, %v116_v47  ;;  %v123_v50 = vld [vmem:[#allocation6 + $0xc8] sm:$0xff]  ;;  %v122_v53 = vld [vmem:[#allocation6 + $0xc0] sm:$0xff]  ;;  %v129_v56 = vld [vmem:[#allocation6 + $0xf8] sm:$0xff] }
  0x56   :  { %1101 = vmatpush1.bf16.msra.mxu1 %v1100_v30  ;;  %451 = vmatprep.mubr.f32.mxu1 %v1427_v0  ;;  %v1122_v52 = vpack.c.bf16 %v126_v51, %v123_v50  ;;  %v1124_v55 = vpack.c.bf16 %v125_v54, %v122_v53  ;;  %v132_v57 = vld [vmem:[#allocation6 + $0x110] sm:$0xff]  ;;  %v131_v60 = vld [vmem:[#allocation6 + $0x108] sm:$0xff]  ;;  %v138_v63 = vld [vmem:[#allocation6 + $0x140] sm:$0xff] }
  0x57   :  { %1103 = vmatprep.subr.bf16.mxu1 %v1102_v33  ;;  %1113 = vmatpush1.bf16.msra.mxu0 %v1112_v36  ;;  %v1126_v58 = vpack.c.bf16 %v132_v57, %v129_v56  ;;  %v128_v59 = vld [vmem:[#allocation6 + $0xf0] sm:$0xff]  ;;  %v135_v62 = vld [vmem:[#allocation6 + $0x128] sm:$0xff]  ;;  %v134_v1 = vld [vmem:[#allocation6 + $0x120] sm:$0xff] }
  0x58   :  { %1115 = vmatprep.subr.bf16.mxu0 %v1114_v40  ;;  %v1128_v61 = vpack.c.bf16 %v131_v60, %v128_v59  ;;  %v1130_v0 = vpack.c.bf16 %v138_v63, %v135_v62  ;;  %v137_v2 = vld [vmem:[#allocation6 + $0x138] sm:$0xff]  ;;  %v144_v5 = vld [vmem:[#allocation6 + $0x170] sm:$0xff]  ;;  %v143_v8 = vld [vmem:[#allocation6 + $0x168] sm:$0xff] }
  0x59   :  { %v1132_v3 = vpack.c.bf16 %v137_v2, %v134_v1  ;;  %v141_v4 = vld [vmem:[#allocation6 + $0x158] sm:$0xff]  ;;  %v140_v7 = vld [vmem:[#allocation6 + $0x150] sm:$0xff]  ;;  %v147_v10 = vld [vmem:[#allocation6 + $0x188] sm:$0xff] }
  0x5a   :  { %1105 = vmatpush1.bf16.msra.mxu1 %v1104_v37  ;;  %v1134_v6 = vpack.c.bf16 %v144_v5, %v141_v4  ;;  %v1136_v9 = vpack.c.bf16 %v143_v8, %v140_v7  ;;  %v150_v11 = vld [vmem:[#allocation6 + $0x1a0] sm:$0xff]  ;;  %v148_v12 = vld [vmem:[#allocation6 + $0x190] sm:$0xff]  ;;  %v151_v14 = vld [vmem:[#allocation6 + $0x1a8] sm:$0xff] }
  0x5b   :  { %1117 = vmatpush1.bf16.msra.mxu0 %v1116_v43  ;;  %v1138_v13 = vpack.c.bf16 %v150_v11, %v147_v10  ;;  %v146_v15 = vld [vmem:[#allocation6 + $0x180] sm:$0xff]  ;;  %v149_v16 = vld [vmem:[#allocation6 + $0x198] sm:$0xff]  ;;  %v1234_v17 = vpack.c.bf16 %v151_v14, %v148_v12  ;;  %v100_v19 = vld [vmem:[#allocation6 + $0x10] sm:$0xff] }
  0x5c   :  { %1119 = vmatprep.subr.bf16.mxu0 %v1118_v46  ;;  %v1140_v18 = vpack.c.bf16 %v149_v16, %v146_v15  ;;  %v103_v20 = vld [vmem:[#allocation6 + $0x28] sm:$0xff]  ;;  %v153_v22 = vld [vmem:[#allocation6 + $0x1b8] sm:$0xff]  ;;  %v156_v23 = vld [vmem:[#allocation6 + $0x1d0] sm:$0xff] }
  0x5d   :  { %1019 = vmatmul.mubr.msk.f32.vlgmr.msra.gmra.mrb[2].mxu1 %vm312_vm0, %v290_v29  ;;  %v1236_v21 = vpack.c.bf16 %v103_v20, %v100_v19  ;;  %1235 = vmatprep.subr.bf16.mxu1 %v1234_v17  ;;  %v154_v24 = vld [vmem:[#allocation6 + $0x1c0] sm:$0xff]  ;;  %v1142_v25 = vpack.c.bf16 %v156_v23, %v153_v22  ;;  %v157_v26 = vld [vmem:[#allocation6 + $0x1d8] sm:$0xff]  ;;  %v152_v27 = vld [vmem:[#allocation6 + $0x1b0] sm:$0xff] }
  0x5e   :  { %v155_v28 = vld [vmem:[#allocation6 + $0x1c8] sm:$0xff]  ;;  %v1238_v29 = vpack.c.bf16 %v157_v26, %v154_v24  ;;  %v106_v31 = vld [vmem:[#allocation6 + $0x40] sm:$0xff]  ;;  %v109_v32 = vld [vmem:[#allocation6 + $0x58] sm:$0xff] }
  0x5f   :  { %1121 = vmatpush1.bf16.msra.mxu0 %v1120_v49  ;;  %1237 = vmatpush3.bf16.msra.mxu1 %v1236_v21  ;;  %v1144_v30 = vpack.c.bf16 %v155_v28, %v152_v27  ;;  %v1240_v33 = vpack.c.bf16 %v109_v32, %v106_v31  ;;  %v159_v34 = vld [vmem:[#allocation6 + $0x1e8] sm:$0xff]  ;;  %v162_v35 = vld [vmem:[#allocation6 + $0x200] sm:$0xff]  ;;  %v160_v36 = vld [vmem:[#allocation6 + $0x1f0] sm:$0xff] }
  0x60   :  { %1123 = vmatprep.subr.bf16.mxu0 %v1122_v52  ;;  %1239 = vmatprep.subr.bf16.mxu1 %v1238_v29  ;;  %v1146_v37 = vpack.c.bf16 %v162_v35, %v159_v34  ;;  %v163_v38 = vld [vmem:[#allocation6 + $0x208] sm:$0xff]  ;;  %v158_v39 = vld [vmem:[#allocation6 + $0x1e0] sm:$0xff]  ;;  %v161_v40 = vld [vmem:[#allocation6 + $0x1f8] sm:$0xff] }
  0x61   :  { %v1242_v41 = vpack.c.bf16 %v163_v38, %v160_v36  ;;  %v1148_v42 = vpack.c.bf16 %v161_v40, %v158_v39  ;;  %v112_v43 = vld [vmem:[#allocation6 + $0x70] sm:$0xff]  ;;  %v115_v44 = vld [vmem:[#allocation6 + $0x88] sm:$0xff]  ;;  %v165_v46 = vld [vmem:[#allocation6 + $0x218] sm:$0xff] }
  0x62   :  { %v1244_v45 = vpack.c.bf16 %v115_v44, %v112_v43  ;;  %v168_v47 = vld [vmem:[#allocation6 + $0x230] sm:$0xff]  ;;  %v166_v48 = vld [vmem:[#allocation6 + $0x220] sm:$0xff]  ;;  %v169_v50 = vld [vmem:[#allocation6 + $0x238] sm:$0xff] }
  0x63   :  { %1125 = vmatpush1.bf16.msra.mxu0 %v1124_v55  ;;  %1241 = vmatpush3.bf16.msra.mxu1 %v1240_v33  ;;  %v1150_v49 = vpack.c.bf16 %v168_v47, %v165_v46  ;;  %v164_v51 = vld [vmem:[#allocation6 + $0x210] sm:$0xff]  ;;  %v167_v52 = vld [vmem:[#allocation6 + $0x228] sm:$0xff]  ;;  %v1246_v53 = vpack.c.bf16 %v169_v50, %v166_v48  ;;  %v118_v55 = vld [vmem:[#allocation6 + $0xa0] sm:$0xff]  ;;  %v292_v48 = vlaneseq }
  0x64   :  { %1127 = vmatprep.subr.bf16.mxu0 %v1126_v58  ;;  %1243 = vmatprep.subr.bf16.mxu1 %v1242_v41  ;;  %v1152_v54 = vpack.c.bf16 %v167_v52, %v164_v51  ;;  %v121_v56 = vld [vmem:[#allocation6 + $0xb8] sm:$0xff]  ;;  %v171_v58 = vld [vmem:[#allocation6 + $0x248] sm:$0xff]  ;;  %v174_v59 = vld [vmem:[#allocation6 + $0x260] sm:$0xff] }
  0x65   :  { %v1248_v57 = vpack.c.bf16 %v121_v56, %v118_v55  ;;  %v172_v60 = vld [vmem:[#allocation6 + $0x250] sm:$0xff]  ;;  %v175_v62 = vld [vmem:[#allocation6 + $0x268] sm:$0xff]  ;;  %v170_v63 = vld [vmem:[#allocation6 + $0x240] sm:$0xff] }
  0x66   :  { %v1250_v1 = vpack.c.bf16 %v175_v62, %v172_v60  ;;  %v127_v4 = vld [vmem:[#allocation6 + $0xe8] sm:$0xff]  ;;  %v180_v7 = vld [vmem:[#allocation6 + $0x290] sm:$0xff]  ;;  %v178_v8 = vld [vmem:[#allocation6 + $0x280] sm:$0xff] }
  0x67   :  { %1129 = vmatpush1.bf16.msra.mxu0 %v1128_v61  ;;  %1245 = vmatpush3.bf16.msra.mxu1 %v1244_v45  ;;  %v1154_v61 = vpack.c.bf16 %v174_v59, %v171_v58  ;;  %v181_v10 = vld [vmem:[#allocation6 + $0x298] sm:$0xff]  ;;  %v176_v11 = vld [vmem:[#allocation6 + $0x270] sm:$0xff]  ;;  %v179_v12 = vld [vmem:[#allocation6 + $0x288] sm:$0xff] }
  0x68   :  { %1131 = vmatprep.subr.bf16.mxu0 %v1130_v0  ;;  %1247 = vmatprep.subr.bf16.mxu1 %v1246_v53  ;;  %v173_v0 = vld [vmem:[#allocation6 + $0x258] sm:$0xff]  ;;  %v1160_v14 = vpack.c.bf16 %v179_v12, %v176_v11  ;;  %v130_v15 = vld [vmem:[#allocation6 + $0x100] sm:$0xff]  ;;  %v184_v20 = vld [vmem:[#allocation6 + $0x2b0] sm:$0xff] }
  0x69   :  { %v1156_v2 = vpack.c.bf16 %v173_v0, %v170_v63  ;;  %v133_v16 = vld [vmem:[#allocation6 + $0x118] sm:$0xff]  ;;  %v186_v19 = vld [vmem:[#allocation6 + $0x2c0] sm:$0xff]  ;;  %v187_v22 = vld [vmem:[#allocation6 + $0x2c8] sm:$0xff] }
  0x6a   :  { %v1256_v17 = vpack.c.bf16 %v133_v16, %v130_v15  ;;  %v182_v23 = vld [vmem:[#allocation6 + $0x2a0] sm:$0xff]  ;;  %v1258_v24 = vpack.c.bf16 %v187_v22, %v184_v20  ;;  %v136_v26 = vld [vmem:[#allocation6 + $0x130] sm:$0xff]  ;;  %v139_v27 = vld [vmem:[#allocation6 + $0x148] sm:$0xff] }
  0x6b   :  { %1133 = vmatpush1.bf16.msra.mxu0 %v1132_v3  ;;  %1249 = vmatpush3.bf16.msra.mxu1 %v1248_v57  ;;  %v124_v3 = vld [vmem:[#allocation6 + $0xd0] sm:$0xff]  ;;  %v1260_v29 = vpack.c.bf16 %v139_v27, %v136_v26  ;;  %v190_v32 = vld [vmem:[#allocation6 + $0x2e0] sm:$0xff]  ;;  %v193_v34 = vld [vmem:[#allocation6 + $0x2f8] sm:$0xff] }
  0x6c   :  { %1135 = vmatprep.subr.bf16.mxu0 %v1134_v6  ;;  %v1252_v5 = vpack.c.bf16 %v127_v4, %v124_v3  ;;  %1251 = vmatprep.subr.bf16.mxu1 %v1250_v1  ;;  %v177_v6 = vld [vmem:[#allocation6 + $0x278] sm:$0xff]  ;;  %v192_v31 = vld [vmem:[#allocation6 + $0x2f0] sm:$0xff]  ;;  %v191_v36 = vld [vmem:[#allocation6 + $0x2e8] sm:$0xff] }
  0x6d   :  { %v188_v35 = vld [vmem:[#allocation6 + $0x2d0] sm:$0xff]  ;;  %v142_v39 = vld [vmem:[#allocation6 + $0x160] sm:$0xff]  ;;  %v145_v40 = vld [vmem:[#allocation6 + $0x178] sm:$0xff] }
  0x6e   :  { %v1168_v38 = vpack.c.bf16 %v191_v36, %v188_v35  ;;  %v1264_v41 = vpack.c.bf16 %v145_v40, %v142_v39  ;;  %v198_v43 = vld [vmem:[#allocation6 + $0x320] sm:$0xff]  ;;  %v244_v44 = vld [vmem:[#allocation6 + $0x490] sm:$0xff]  ;;  %v247_v46 = vld [vmem:[#allocation6 + $0x4a8] sm:$0xff] }
  0x6f   :  { %1137 = vmatpush1.bf16.msra.mxu0 %v1136_v9  ;;  %1253 = vmatpush3.bf16.msra.mxu1 %v1252_v5  ;;  %v1158_v9 = vpack.c.bf16 %v180_v7, %v177_v6  ;;  %v1266_v47 = vpack.c.bf16 %v247_v46, %v244_v44  ;;  %v68_v51 = vld [vmem:[#allocation7] ss:$8 sm:$0xf] }
  0x70   :  { %1139 = vmatprep.subr.bf16.mxu0 %v1138_v13  ;;  %v1254_v13 = vpack.c.bf16 %v181_v10, %v178_v8 }
  0x72   :  { %1255 = vmatprep.subr.bf16.mxu1 %v1254_v13 }
  0x73   :  { %1141 = vmatpush1.bf16.msra.mxu0 %v1140_v18  ;;  %v183_v18 = vld [vmem:[#allocation6 + $0x2a8] sm:$0xff]  ;;  %1257 = vmatpush3.bf16.msra.mxu1 %v1256_v17 }
  0x74   :  { %1143 = vmatprep.subr.bf16.mxu0 %v1142_v25  ;;  %v1162_v21 = vpack.c.bf16 %v186_v19, %v183_v18  ;;  %v185_v25 = vld [vmem:[#allocation6 + $0x2b8] sm:$0xff]  ;;  %1259 = vmatprep.subr.bf16.mxu1 %v1258_v24 }
  0x75   :  { %v1164_v28 = vpack.c.bf16 %v185_v25, %v182_v23 }
  0x77   :  { %1145 = vmatpush1.bf16.msra.mxu0 %v1144_v30  ;;  %v189_v30 = vld [vmem:[#allocation6 + $0x2d8] sm:$0xff]  ;;  %1261 = vmatpush3.bf16.msra.mxu1 %v1260_v29 }
  0x78   :  { %1147 = vmatprep.subr.bf16.mxu0 %v1146_v37  ;;  %v1166_v33 = vpack.c.bf16 %v192_v31, %v189_v30  ;;  %v1262_v37 = vpack.c.bf16 %v193_v34, %v190_v32 }
  0x7a   :  { %1263 = vmatprep.subr.bf16.mxu1 %v1262_v37 }
  0x7b   :  { %1149 = vmatpush1.bf16.msra.mxu0 %v1148_v42  ;;  %v195_v42 = vld [vmem:[#allocation6 + $0x308] sm:$0xff]  ;;  %1265 = vmatpush3.bf16.msra.mxu1 %v1264_v41 }
  0x7c   :  { %1151 = vmatprep.subr.bf16.mxu0 %v1150_v49  ;;  %v1170_v45 = vpack.c.bf16 %v198_v43, %v195_v42  ;;  %1267 = vmatprep.subr.bf16.mxu1 %v1266_v47  ;;  %v293_v49 = vshrl.u32 %v292_v48, 7 }
  0x7e   :  { %v1503_v50 = vsub.s32 0, %v293_v49  ;;  %v1505_v52 = vsub.s32 1, %v293_v49  ;;  %v1509_v58 = vsub.s32 2, %v293_v49  ;;  %v1511_v60 = vsub.s32 3, %v293_v49 }
  0x7f   :  { %1153 = vmatpush1.bf16.msra.mxu0 %v1152_v54 }
  0x80   :  { %1155 = vmatprep.subr.bf16.mxu0 %v1154_v61  ;;  %v295_v53 = vrot.slane %v68_v51, %v1503_v50  ;;  %v299_v54 = vrot.slane %v68_v51, %v1505_v52  ;;  %v303_v0 = vrot.slane %v68_v51, %v1509_v58 }
  0x83   :  { %1157 = vmatpush1.bf16.msra.mxu0 %v1156_v2  ;;  %v307_v2 = vrot.slane %v68_v51, %v1511_v60 }
  0x84   :  { %1159 = vmatprep.subr.bf16.mxu0 %v1158_v9 }
  0x87   :  { %1161 = vmatpush1.bf16.msra.mxu0 %v1160_v14 }
  0x88   :  { %1163 = vmatprep.subr.bf16.mxu0 %v1162_v21 }
  0x8b   :  { %1165 = vmatpush1.bf16.msra.mxu0 %v1164_v28 }
  0x8c   :  { %1167 = vmatprep.subr.bf16.mxu0 %v1166_v33 }
  0x8f   :  { %1169 = vmatpush1.bf16.msra.mxu0 %v1168_v38 }
  0x90   :  { %1171 = vmatprep.subr.bf16.mxu0 %v1170_v45 }
 0x128   :  { %v382_v55 = vpop.f32.mrb[0].mxu1 }
 0x129   :  { %v383_v56 = vadd.f32 %v382_v55, %v295_v53  ;;  %v384_v57 = vpop.f32.mrb[1].mxu1 }
 0x12a   :  { %v385_v59 = vadd.f32 %v384_v57, %v299_v54 }
 0x12b   :  { %v458_v61 = vrot.slane %v383_v56, 4 }
 0x12c   :  { %v464_v62 = vrot.slane %v385_v59, 4 }
 0x12d   :  { %v459_v63 = vadd.f32 %v458_v61, %v383_v56 }
 0x12e   :  { %v465_v1 = vadd.f32 %v464_v62, %v385_v59 }
 0x12f   :  { %v460_v3 = vrot.slane %v459_v63, 2 }
 0x130   :  { %v466_v4 = vrot.slane %v465_v1, 2  ;;  %v453_v5 = vpop.f32.mrb[2].mxu1 }
 0x131   :  { %v461_v6 = vadd.f32 %v460_v3, %v459_v63  ;;  %v454_v7 = vadd.f32 %v453_v5, %v303_v0  ;;  %v455_v8 = vpop.f32.mrb[3].mxu1  ;;  %v1523_v5 = vld [vmem:[#allocation7 + $0x1] ss:$8 sm:$0xf] }
 0x132   :  { %v467_v9 = vadd.f32 %v466_v4, %v465_v1  ;;  %v456_v10 = vadd.f32 %v455_v8, %v307_v2  ;;  %v1525_v8 = vld [vmem:[#allocation7 + $0x2] ss:$8 sm:$0xf] }
 0x133   :  { %v462_v11 = vrot.slane %v461_v6, 1  ;;  %v470_v12 = vrot.slane %v454_v7, 4 }
 0x134   :  { %v468_v13 = vrot.slane %v467_v9, 1  ;;  %v476_v14 = vrot.slane %v456_v10, 4 }
 0x135   :  { %v463_v15 = vadd.f32 %v462_v11, %v461_v6  ;;  %v471_v16 = vadd.f32 %v470_v12, %v454_v7  ;;  %v543_v12 = vrot.slane %v1523_v5, %v1505_v52 }
 0x136   :  { %v469_v17 = vadd.f32 %v468_v13, %v467_v9  ;;  %v477_v18 = vadd.f32 %v476_v14, %v456_v10  ;;  %v539_v9 = vrot.slane %v1523_v5, %v1503_v50 }
 0x137   :  { %v483_v19 = vmul.f32 0.125, %v463_v15  ;;  %v472_v20 = vrot.slane %v471_v16, 2  ;;  %v564_v15 = vrot.slane %v1525_v8, %v1503_v50 }
 0x138   :  { %v484_v21 = vmul.f32 0.125, %v469_v17  ;;  %v478_v22 = vrot.slane %v477_v18, 2  ;;  %v568_v17 = vrot.slane %v1525_v8, %v1505_v52 }
 0x139   :  { %v487_v23 = vsub.f32 %v383_v56, %v483_v19  ;;  %v473_v24 = vadd.f32 %v472_v20, %v471_v16 }
 0x13a   :  { %v488_v25 = vsub.f32 %v385_v59, %v484_v21  ;;  %v479_v26 = vadd.f32 %v478_v22, %v477_v18  ;;  %v194_v21 = vld [vmem:[#allocation6 + $0x300] sm:$0xff]  ;;  %v197_v22 = vld [vmem:[#allocation6 + $0x318] sm:$0xff] }
 0x13b   :  { %v491_v27 = vmul.f32 %v487_v23, %v487_v23  ;;  %v474_v28 = vrot.slane %v473_v24, 1 }
 0x13c   :  { %v492_v29 = vmul.f32 %v488_v25, %v488_v25  ;;  %v480_v30 = vrot.slane %v479_v26, 1 }
 0x13d   :  { %v495_v31 = vrot.slane %v491_v27, 4  ;;  %v475_v32 = vadd.f32 %v474_v28, %v473_v24  ;;  %v201_v28 = vld [vmem:[#allocation6 + $0x338] sm:$0xff] }
 0x13e   :  { %v501_v33 = vrot.slane %v492_v29, 4  ;;  %v481_v34 = vadd.f32 %v480_v30, %v479_v26  ;;  %v196_v26 = vld [vmem:[#allocation6 + $0x310] sm:$0xff] }
 0x13f   :  { %v496_v35 = vadd.f32 %v495_v31, %v491_v27  ;;  %v485_v36 = vmul.f32 0.125, %v475_v32  ;;  %v199_v27 = vld [vmem:[#allocation6 + $0x328] sm:$0xff]  ;;  %v204_v30 = vld [vmem:[#allocation6 + $0x350] sm:$0xff]  ;;  %v250_v31 = vld [vmem:[#allocation6 + $0x4c0] sm:$0xff]  ;;  %v1172_v32 = vpack.c.bf16 %v197_v22, %v194_v21 }
 0x140   :  { %v502_v37 = vadd.f32 %v501_v33, %v492_v29  ;;  %v486_v38 = vmul.f32 0.125, %v481_v34  ;;  %v218_v22 = vld [vmem:[#allocation6 + $0x3c0] sm:$0xff] }
 0x141   :  { %v497_v39 = vrot.slane %v496_v35, 2  ;;  %v1515_v40 = vsub.f32 %v454_v7, %v485_v36  ;;  %v203_v36 = vld [vmem:[#allocation6 + $0x348] sm:$0xff] }
 0x142   :  { %v503_v41 = vrot.slane %v502_v37, 2  ;;  %v1517_v42 = vsub.f32 %v456_v10, %v486_v38 }
 0x143   :  { %v498_v43 = vadd.f32 %v497_v39, %v496_v35  ;;  %v493_v44 = vmul.f32 %v1515_v40, %v1515_v40  ;;  %v200_v35 = vld [vmem:[#allocation6 + $0x330] sm:$0xff] }
 0x144   :  { %v504_v45 = vadd.f32 %v503_v41, %v502_v37  ;;  %v494_v46 = vmul.f32 %v1517_v42, %v1517_v42  ;;  %v551_v37 = vrot.slane %v1523_v5, %v1511_v60  ;;  %v1174_v41 = vpack.c.bf16 %v204_v30, %v201_v28  ;;  %v220_v28 = vld [vmem:[#allocation6 + $0x3d0] sm:$0xff]  ;;  %v225_v30 = vld [vmem:[#allocation6 + $0x3f8] sm:$0xff] }
 0x145   :  { %v499_v47 = vrot.slane %v498_v43, 1  ;;  %v507_v53 = vrot.slane %v493_v44, 4 }
 0x146   :  { %v505_v48 = vrot.slane %v504_v45, 1  ;;  %v513_v49 = vrot.slane %v494_v46, 4 }
 0x147   :  { %v500_v51 = vadd.f32 %v499_v47, %v498_v43  ;;  %v508_v62 = vadd.f32 %v507_v53, %v493_v44  ;;  %v202_v44 = vld [vmem:[#allocation6 + $0x340] sm:$0xff]  ;;  %v576_v53 = vrot.slane %v1525_v8, %v1511_v60  ;;  %v265_v60 = vld [vmem:[#allocation6 + $0x538] sm:$0xff] }
 0x148   :  { %v506_v54 = vadd.f32 %v505_v48, %v504_v45  ;;  %v514_v55 = vadd.f32 %v513_v49, %v494_v46  ;;  %v205_v45 = vld [vmem:[#allocation6 + $0x358] sm:$0xff]  ;;  %v207_v46 = vld [vmem:[#allocation6 + $0x368] sm:$0xff]  ;;  %v210_v48 = vld [vmem:[#allocation6 + $0x380] sm:$0xff] }
 0x149   :  { %v519_v56 = vmul.f32 0.125, %v500_v51  ;;  %v509_v2 = vrot.slane %v508_v62, 2  ;;  %v256_v49 = vld [vmem:[#allocation6 + $0x4f0] sm:$0xff]  ;;  %v259_v51 = vld [vmem:[#allocation6 + $0x508] sm:$0xff] }
 0x14a   :  { %v520_v57 = vmul.f32 0.125, %v506_v54  ;;  %v515_v59 = vrot.slane %v514_v55, 2 }
 0x14b   :  { %v523_v61 = vadd.f32 1e-05, %v519_v56  ;;  %v510_v6 = vadd.f32 %v509_v2, %v508_v62  ;;  %v1272_v56 = vpack.c.bf16 %v205_v45, %v202_v44  ;;  %v1274_v62 = vpack.c.bf16 %v259_v51, %v256_v49  ;;  %v216_v2 = vld [vmem:[#allocation6 + $0x3b0] sm:$0xff]  ;;  %v234_v44 = vld [vmem:[#allocation6 + $0x440] sm:$0xff] }
 0x14c   :  { %v524_v63 = vadd.f32 1e-05, %v520_v57  ;;  %v516_v0 = vadd.f32 %v515_v59, %v514_v55  ;;  %v1176_v55 = vpack.c.bf16 %v203_v36, %v200_v35  ;;  %v206_v57 = vld [vmem:[#allocation6 + $0x360] sm:$0xff]  ;;  %v209_v59 = vld [vmem:[#allocation6 + $0x378] sm:$0xff]  ;;  %v227_v35 = vld [vmem:[#allocation6 + $0x408] sm:$0xff] }
 0x14d   :  { %1311 = vrsqrt.f32 %v523_v61  ;;  %v511_v11 = vrot.slane %v510_v6, 1  ;;  %v280_v45 = vld [vmem:[#allocation6 + $0x5b0] sm:$0xff]  ;;  %v230_v51 = vld [vmem:[#allocation6 + $0x420] sm:$0xff] }
 0x14e   :  { %1313 = vrsqrt.f32 %v524_v63  ;;  %v517_v1 = vrot.slane %v516_v0, 1  ;;  %v208_v63 = vld [vmem:[#allocation6 + $0x370] sm:$0xff] }
 0x14f   :  { %v512_v19 = vadd.f32 %v511_v11, %v510_v6  ;;  %v1180_v6 = vpack.c.bf16 %v209_v59, %v206_v57  ;;  %v232_v57 = vld [vmem:[#allocation6 + $0x430] sm:$0xff]  ;;  %v235_v59 = vld [vmem:[#allocation6 + $0x448] sm:$0xff] }
 0x150   :  { %v518_v3 = vadd.f32 %v517_v1, %v516_v0  ;;  %v211_v0 = vld [vmem:[#allocation6 + $0x388] sm:$0xff]  ;;  %v213_v1 = vld [vmem:[#allocation6 + $0x398] sm:$0xff] }
 0x151   :  { %v521_v33 = vmul.f32 0.125, %v512_v19  ;;  %v271_v19 = vld [vmem:[#allocation6 + $0x568] sm:$0xff] }
 0x152   :  { %v522_v4 = vmul.f32 0.125, %v518_v3  ;;  %v262_v3 = vld [vmem:[#allocation6 + $0x520] sm:$0xff] }
 0x153   :  { %v525_v54 = vadd.f32 1e-05, %v521_v33 }
 0x154   :  { %v526_v7 = vadd.f32 1e-05, %v522_v4 }
 0x156   :  { %1315 = vrsqrt.f32 %v526_v7  ;;  %v1276_v7 = vpack.c.bf16 %v211_v0, %v208_v63  ;;  %v289_v63 = vld [vmem:[#allocation6 + $0x5f8] sm:$0xff]  ;;  %v1292_v0 = vpack.c.bf16 %v235_v59, %v232_v57  ;;  %v288_v59 = vld [vmem:[#allocation6 + $0x5f0] sm:$0xff] }
 0x157   :  { %v1312_v10 = vpop.eup %1311  ;;  %1317 = vrsqrt.f32 %v525_v54  ;;  %v285_v57 = vld [vmem:[#allocation6 + $0x5d8] sm:$0xff] }
 0x158   :  { %v1314_v13 = vpop.eup %1313  ;;  %v531_v14 = vmul.f32 %v1312_v10, %v487_v23  ;;  %v253_v23 = vld [vmem:[#allocation6 + $0x4d8] sm:$0xff]  ;;  %v215_v10 = vld [vmem:[#allocation6 + $0x3a8] sm:$0xff] }
 0x159   :  { %v532_v16 = vmul.f32 %v1314_v13, %v488_v25  ;;  %v1268_v25 = vpack.c.bf16 %v199_v27, %v196_v26  ;;  %v1270_v43 = vpack.c.bf16 %v253_v23, %v250_v31  ;;  %v1278_v13 = vpack.c.bf16 %v265_v60, %v262_v3  ;;  %v228_v31 = vld [vmem:[#allocation6 + $0x410] sm:$0xff]  ;;  %v274_v23 = vld [vmem:[#allocation6 + $0x580] sm:$0xff] }
 0x15a   :  { %v556_v18 = vmul.f32 %v539_v9, %v531_v14  ;;  %v212_v9 = vld [vmem:[#allocation6 + $0x390] sm:$0xff]  ;;  %v214_v14 = vld [vmem:[#allocation6 + $0x3a0] sm:$0xff]  ;;  %v1190_v36 = vpack.c.bf16 %v228_v31, %v225_v30  ;;  %v257_v30 = vld [vmem:[#allocation6 + $0x4f8] sm:$0xff] }
 0x15b   :  { %v557_v20 = vmul.f32 %v543_v12, %v532_v16  ;;  %v1182_v12 = vpack.c.bf16 %v216_v2, %v213_v1  ;;  %v219_v16 = vld [vmem:[#allocation6 + $0x3c8] sm:$0xff]  ;;  %v236_v1 = vld [vmem:[#allocation6 + $0x450] sm:$0xff]  ;;  %v572_v2 = vrot.slane %v1525_v8, %v1509_v58  ;;  %v242_v8 = vld [vmem:[#allocation6 + $0x480] sm:$0xff] }
 0x15c   :  { %v581_v24 = vadd.f32 %v564_v15, %v556_v18  ;;  %v217_v15 = vld [vmem:[#allocation6 + $0x3b8] sm:$0xff]  ;;  %v268_v18 = vld [vmem:[#allocation6 + $0x550] sm:$0xff] }
 0x15d   :  { %v582_v29 = vadd.f32 %v568_v17, %v557_v20  ;;  %v222_v17 = vld [vmem:[#allocation6 + $0x3e0] sm:$0xff]  ;;  %v1184_v20 = vpack.c.bf16 %v215_v10, %v212_v9  ;;  %v1280_v21 = vpack.c.bf16 %v217_v15, %v214_v14  ;;  %v1282_v27 = vpack.c.bf16 %v271_v19, %v268_v18  ;;  %v243_v9 = vld [vmem:[#allocation6 + $0x488] sm:$0xff]  ;;  %v245_v15 = vld [vmem:[#allocation6 + $0x498] sm:$0xff] }
 0x15e   :  { %v585_v39 = vmax.f32 %v581_v24, 0.0  ;;  %v221_v24 = vld [vmem:[#allocation6 + $0x3d8] sm:$0xff]  ;;  %v1186_v26 = vpack.c.bf16 %v222_v17, %v219_v16  ;;  %v246_v10 = vld [vmem:[#allocation6 + $0x4a0] sm:$0xff]  ;;  %v252_v17 = vld [vmem:[#allocation6 + $0x4d0] sm:$0xff]  ;;  %v1204_v18 = vpack.c.bf16 %v245_v15, %v242_v8 }
 0x15f   :  { %v586_v34 = vmax.f32 %v582_v29, 0.0  ;;  %v223_v29 = vld [vmem:[#allocation6 + $0x3e8] sm:$0xff]  ;;  %v1188_v33 = vpack.c.bf16 %v221_v24, %v218_v22  ;;  %v249_v16 = vld [vmem:[#allocation6 + $0x4b8] sm:$0xff] }
 0x160   :  { %v1316_v38 = vpop.eup %1315  ;;  %v251_v22 = vld [vmem:[#allocation6 + $0x4c8] sm:$0xff]  ;;  %v261_v31 = vld [vmem:[#allocation6 + $0x518] sm:$0xff] }
 0x161   :  { %v534_v47 = vmul.f32 %v1316_v38, %v1517_v42  ;;  %669 = vmatprep.mubr.f32.mxu0 %v586_v34  ;;  %811 = vmatprep.mubr.f32.mxu1 %v586_v34  ;;  %v1178_v42 = vpack.c.bf16 %v210_v48, %v207_v46  ;;  %v1284_v34 = vpack.c.bf16 %v223_v29, %v220_v28  ;;  %v226_v38 = vld [vmem:[#allocation6 + $0x400] sm:$0xff]  ;;  %v283_v46 = vld [vmem:[#allocation6 + $0x5c8] sm:$0xff] }
 0x162   :  { %670 = vmatmul.mubr.f32.vlgmr.msra.gmra.mrb[0].mxu0 %v585_v39  ;;  %812 = vmatmul.mubr.f32.vlgmr.msra.gmra.mrb[4].mxu1 %v585_v39  ;;  %v229_v39 = vld [vmem:[#allocation6 + $0x418] sm:$0xff]  ;;  %v255_v24 = vld [vmem:[#allocation6 + $0x4e8] sm:$0xff]  ;;  %v254_v29 = vld [vmem:[#allocation6 + $0x4e0] sm:$0xff] }
 0x163   :  { %1173 = vmatpush1.bf16.msra.mxu0 %v1172_v32  ;;  %1269 = vmatpush3.bf16.msra.mxu1 %v1268_v25  ;;  %v559_v61 = vmul.f32 %v551_v37, %v534_v47  ;;  %v277_v32 = vld [vmem:[#allocation6 + $0x598] sm:$0xff]  ;;  %v224_v25 = vld [vmem:[#allocation6 + $0x3f0] sm:$0xff]  ;;  %v547_v47 = vrot.slane %v1523_v5, %v1509_v58  ;;  %v1288_v49 = vpack.c.bf16 %v229_v39, %v226_v38  ;;  %v266_v39 = vld [vmem:[#allocation6 + $0x540] sm:$0xff] }
 0x164   :  { %1175 = vmatprep.subr.bf16.mxu0 %v1174_v41  ;;  %1271 = vmatprep.subr.bf16.mxu1 %v1270_v43  ;;  %v1286_v37 = vpack.c.bf16 %v277_v32, %v274_v23  ;;  %v231_v41 = vld [vmem:[#allocation6 + $0x428] sm:$0xff]  ;;  %v1318_v43 = vpop.eup %1317  ;;  %v1192_v48 = vpack.c.bf16 %v227_v35, %v224_v25  ;;  %v264_v23 = vld [vmem:[#allocation6 + $0x530] sm:$0xff]  ;;  %v1212_v32 = vpack.c.bf16 %v257_v30, %v254_v29 }
 0x165   :  { %v584_v4 = vadd.f32 %v576_v53, %v559_v61  ;;  %v233_v53 = vld [vmem:[#allocation6 + $0x438] sm:$0xff]  ;;  %v533_v54 = vmul.f32 %v1318_v43, %v1515_v40  ;;  %v263_v25 = vld [vmem:[#allocation6 + $0x528] sm:$0xff] }
 0x166   :  { %v237_v61 = vld [vmem:[#allocation6 + $0x458] sm:$0xff]  ;;  %v1196_v5 = vpack.c.bf16 %v233_v53, %v230_v51  ;;  %v267_v35 = vld [vmem:[#allocation6 + $0x548] sm:$0xff]  ;;  %v282_v51 = vld [vmem:[#allocation6 + $0x5c0] sm:$0xff] }
 0x167   :  { %1177 = vmatpush1.bf16.msra.mxu0 %v1176_v55  ;;  %1273 = vmatpush3.bf16.msra.mxu1 %v1272_v56  ;;  %v588_v11 = vmax.f32 %v584_v4, 0.0  ;;  %v1194_v55 = vpack.c.bf16 %v234_v44, %v231_v41  ;;  %v1290_v56 = vpack.c.bf16 %v283_v46, %v280_v45  ;;  %v558_v3 = vmul.f32 %v547_v47, %v533_v54  ;;  %v239_v4 = vld [vmem:[#allocation6 + $0x468] sm:$0xff]  ;;  %v269_v41 = vld [vmem:[#allocation6 + $0x558] sm:$0xff]  ;;  %v276_v44 = vld [vmem:[#allocation6 + $0x590] sm:$0xff] }
 0x168   :  { %1179 = vmatprep.subr.bf16.mxu0 %v1178_v42  ;;  %1275 = vmatprep.subr.bf16.mxu1 %v1274_v62  ;;  %v240_v42 = vld [vmem:[#allocation6 + $0x470] sm:$0xff]  ;;  %v286_v62 = vld [vmem:[#allocation6 + $0x5e0] sm:$0xff]  ;;  %v273_v43 = vld [vmem:[#allocation6 + $0x578] sm:$0xff]  ;;  %v1220_v45 = vpack.c.bf16 %v269_v41, %v266_v39 }
 0x169   :  { %740 = vmatprep.mubr.f32.mxu0 %v588_v11  ;;  %881 = vmatprep.mubr.f32.mxu1 %v588_v11  ;;  %v1198_v40 = vpack.c.bf16 %v240_v42, %v237_v61  ;;  %v1294_v60 = vpack.c.bf16 %v289_v63, %v286_v62  ;;  %v1200_v11 = vpack.c.bf16 %v239_v4, %v236_v1  ;;  %v272_v47 = vld [vmem:[#allocation6 + $0x570] sm:$0xff]  ;;  %v287_v63 = vld [vmem:[#allocation6 + $0x5e8] sm:$0xff] }
 0x16a   :  { %v1545_v14 = vadd.f32 %v572_v2, %v558_v3  ;;  %v1222_v46 = vpack.c.bf16 %v276_v44, %v273_v43  ;;  %v1230_v42 = vpack.c.bf16 %v288_v59, %v285_v57  ;;  %v284_v62 = vld [vmem:[#allocation6 + $0x5d0] sm:$0xff] }
 0x16b   :  { %1181 = vmatpush1.bf16.msra.mxu0 %v1180_v6  ;;  %1277 = vmatpush3.bf16.msra.mxu1 %v1276_v7  ;;  %v238_v6 = vld [vmem:[#allocation6 + $0x460] sm:$0xff]  ;;  %v241_v7 = vld [vmem:[#allocation6 + $0x478] sm:$0xff] }
 0x16c   :  { %1183 = vmatprep.subr.bf16.mxu0 %v1182_v12  ;;  %1279 = vmatprep.subr.bf16.mxu1 %v1278_v13  ;;  %v1296_v12 = vpack.c.bf16 %v241_v7, %v238_v6  ;;  %v1202_v13 = vpack.c.bf16 %v246_v10, %v243_v9  ;;  %v587_v19 = vmax.f32 %v1545_v14, 0.0  ;;  %v74_v3 = vld [vmem:[#allocation7 + $0x3] ss:$8 sm:$0x7] }
 0x16f   :  { %1185 = vmatpush1.bf16.msra.mxu0 %v1184_v20  ;;  %1281 = vmatpush3.bf16.msra.mxu1 %v1280_v21  ;;  %v1206_v20 = vpack.c.bf16 %v252_v17, %v249_v16  ;;  %v248_v21 = vld [vmem:[#allocation6 + $0x4b0] sm:$0xff] }
 0x170   :  { %1187 = vmatprep.subr.bf16.mxu0 %v1186_v26  ;;  %1283 = vmatprep.subr.bf16.mxu1 %v1282_v27  ;;  %v258_v26 = vld [vmem:[#allocation6 + $0x500] sm:$0xff]  ;;  %v1208_v27 = vpack.c.bf16 %v251_v22, %v248_v21 }
 0x171   :  { %v1210_v28 = vpack.c.bf16 %v258_v26, %v255_v24 }
 0x173   :  { %1189 = vmatpush1.bf16.msra.mxu0 %v1188_v33  ;;  %1285 = vmatpush3.bf16.msra.mxu1 %v1284_v34  ;;  %v1214_v33 = vpack.c.bf16 %v264_v23, %v261_v31  ;;  %v260_v34 = vld [vmem:[#allocation6 + $0x510] sm:$0xff] }
 0x174   :  { %1191 = vmatprep.subr.bf16.mxu0 %v1190_v36  ;;  %1287 = vmatprep.subr.bf16.mxu1 %v1286_v37  ;;  %v270_v36 = vld [vmem:[#allocation6 + $0x560] sm:$0xff]  ;;  %v1216_v37 = vpack.c.bf16 %v263_v25, %v260_v34 }
 0x175   :  { %v1218_v38 = vpack.c.bf16 %v270_v36, %v267_v35 }
 0x177   :  { %1193 = vmatpush1.bf16.msra.mxu0 %v1192_v48  ;;  %1289 = vmatpush3.bf16.msra.mxu1 %v1288_v49  ;;  %v275_v48 = vld [vmem:[#allocation6 + $0x588] sm:$0xff] }
 0x178   :  { %1195 = vmatprep.subr.bf16.mxu0 %v1194_v55  ;;  %1291 = vmatprep.subr.bf16.mxu1 %v1290_v56  ;;  %v279_v49 = vld [vmem:[#allocation6 + $0x5a8] sm:$0xff]  ;;  %v1224_v53 = vpack.c.bf16 %v275_v48, %v272_v47  ;;  %v278_v55 = vld [vmem:[#allocation6 + $0x5a0] sm:$0xff]  ;;  %v281_v56 = vld [vmem:[#allocation6 + $0x5b8] sm:$0xff] }
 0x179   :  { %v1226_v54 = vpack.c.bf16 %v282_v51, %v279_v49  ;;  %v1228_v61 = vpack.c.bf16 %v281_v56, %v278_v55 }
 0x17b   :  { %1197 = vmatpush1.bf16.msra.mxu0 %v1196_v5  ;;  %1293 = vmatpush3.bf16.msra.mxu1 %v1292_v0  ;;  %v1232_v5 = vpack.c.bf16 %v287_v63, %v284_v62 }
 0x17c   :  { %1199 = vmatprep.subr.bf16.mxu0 %v1198_v40  ;;  %1295 = vmatprep.subr.bf16.mxu1 %v1294_v60  ;;  %v601_v40 = vrot.slane %v74_v3, %v1509_v58 }
 0x17f   :  { %1201 = vmatpush1.bf16.msra.mxu0 %v1200_v11  ;;  %1297 = vmatpush3.bf16.msra.mxu1 %v1296_v12 }
 0x180   :  { %1203 = vmatprep.subr.bf16.mxu0 %v1202_v13 }
 0x182   :  { %882 = vmatmul.mubr.f32.vlgmr.msra.gmra.mrb[6].mxu1 %v587_v19 }
 0x183   :  { %1205 = vmatpush1.bf16.msra.mxu0 %v1204_v18  ;;  %v593_v18 = vrot.slane %v74_v3, %v1503_v50 }
 0x184   :  { %1207 = vmatprep.subr.bf16.mxu0 %v1206_v20  ;;  %v597_v20 = vrot.slane %v74_v3, %v1505_v52 }
 0x187   :  { %1209 = vmatpush1.bf16.msra.mxu0 %v1208_v27 }
 0x188   :  { %1211 = vmatprep.subr.bf16.mxu0 %v1210_v28 }
 0x18b   :  { %1213 = vmatpush1.bf16.msra.mxu0 %v1212_v32 }
 0x18c   :  { %1215 = vmatprep.subr.bf16.mxu0 %v1214_v33 }
 0x18f   :  { %1217 = vmatpush1.bf16.msra.mxu0 %v1216_v37 }
 0x190   :  { %1219 = vmatprep.subr.bf16.mxu0 %v1218_v38 }
 0x193   :  { %1221 = vmatpush1.bf16.msra.mxu0 %v1220_v45 }
 0x194   :  { %1223 = vmatprep.subr.bf16.mxu0 %v1222_v46 }
 0x197   :  { %1225 = vmatpush1.bf16.msra.mxu0 %v1224_v53 }
 0x198   :  { %1227 = vmatprep.subr.bf16.mxu0 %v1226_v54 }
 0x19b   :  { %1229 = vmatpush1.bf16.msra.mxu0 %v1228_v61 }
 0x19c   :  { %1231 = vmatprep.subr.bf16.mxu0 %v1230_v42 }
 0x19f   :  { %1233 = vmatpush1.bf16.msra.mxu0 %v1232_v5 }
 0x1a2   :  { %741 = vmatmul.mubr.f32.vlgmr.msra.gmra.mrb[0].mxu0 %v587_v19 }
 0x235   :  { %v1052_v0 = vpop.f32.mrb[4].mxu1 }
 0x236   :  { %v1053_v1 = vpop.f32.mrb[5].mxu1 }
 0x237   :  { %v1054_v2 = vadd.f32 %v1053_v1, %v1052_v0 }
 0x239   :  { %v814_v6 = vadd.f32 %v1054_v2, %v601_v40 }
 0x255   :  { %v1087_v60 = vpop.f32.mrb[6].mxu1 }
 0x256   :  { %v1088_v4 = vpop.f32.mrb[7].mxu1 }
 0x257   :  { %v1089_v7 = vadd.f32 %v1088_v4, %v1087_v60 }
 0x259   :  { %v884_v9 = vadd.f32 %v1089_v7, %v814_v6  ;;  %v76_v6 = vld [vmem:[#allocation7 + $0x4] ss:$8 sm:$0x7] }
 0x25b   :  { %v899_v10 = vrot.slane %v884_v9, 4 }
 0x25d   :  { %v900_v11 = vadd.f32 %v899_v10, %v884_v9  ;;  %v78_v10 = vld [vmem:[#allocation7 + $0x5] ss:$8 sm:$0x7] }
 0x25f   :  { %v901_v12 = vrot.slane %v900_v11, 2 }
 0x261   :  { %v902_v13 = vadd.f32 %v901_v12, %v900_v11  ;;  %v948_v11 = vrot.slane %v76_v6, %v1503_v50 }
 0x263   :  { %v903_v14 = vrot.slane %v902_v13, 1 }
 0x265   :  { %v904_v8 = vadd.f32 %v903_v14, %v902_v13  ;;  %v952_v13 = vrot.slane %v76_v6, %v1505_v52 }
 0x267   :  { %v907_v15 = vmul.f32 0.125, %v904_v8  ;;  %v975_v8 = vrot.slane %v78_v10, %v1509_v58 }
 0x269   :  { %v910_v16 = vsub.f32 %v884_v9, %v907_v15  ;;  %v956_v9 = vrot.slane %v76_v6, %v1509_v58 }
 0x26b   :  { %v913_v17 = vmul.f32 %v910_v16, %v910_v16 }
 0x26d   :  { %v926_v19 = vrot.slane %v913_v17, 4 }
 0x26f   :  { %v927_v26 = vadd.f32 %v926_v19, %v913_v17 }
 0x271   :  { %v928_v31 = vrot.slane %v927_v26, 2 }
 0x273   :  { %v929_v25 = vadd.f32 %v928_v31, %v927_v26 }
 0x275   :  { %v742_v21 = vpop.f32.mrb[0].mxu0  ;;  %v930_v39 = vrot.slane %v929_v25, 1 }
 0x276   :  { %v1298_v22 = vadd.f32 %v742_v21, %v593_v18  ;;  %v744_v24 = vpop.f32.mrb[1].mxu0  ;;  %v967_v18 = vrot.slane %v78_v10, %v1503_v50 }
 0x277   :  { %v1299_v27 = vadd.f32 %v744_v24, %v597_v20  ;;  %v931_v46 = vadd.f32 %v930_v39, %v929_v25  ;;  %v971_v20 = vrot.slane %v78_v10, %v1505_v52 }
 0x278   :  { %v887_v28 = vrot.slane %v1298_v22, 4 }
 0x279   :  { %v893_v29 = vrot.slane %v1299_v27, 4  ;;  %v934_v53 = vmul.f32 0.125, %v931_v46 }
 0x27a   :  { %v888_v30 = vadd.f32 %v1298_v22, %v887_v28 }
 0x27b   :  { %v894_v23 = vadd.f32 %v1299_v27, %v893_v29  ;;  %v937_v59 = vadd.f32 1e-05, %v934_v53 }
 0x27c   :  { %v889_v32 = vrot.slane %v888_v30, 2 }
 0x27d   :  { %v895_v33 = vrot.slane %v894_v23, 2  ;;  %1319 = vrsqrt.f32 %v937_v59 }
 0x27e   :  { %v890_v34 = vadd.f32 %v889_v32, %v888_v30 }
 0x27f   :  { %v896_v35 = vadd.f32 %v895_v33, %v894_v23 }
 0x280   :  { %v891_v36 = vrot.slane %v890_v34, 1 }
 0x281   :  { %v897_v37 = vrot.slane %v896_v35, 1 }
 0x282   :  { %v892_v38 = vadd.f32 %v891_v36, %v890_v34 }
 0x283   :  { %v898_v41 = vadd.f32 %v897_v37, %v896_v35  ;;  %v81_v37 = vld [vmem:[#allocation7 + $0x7] ss:$0 sm:$0xff] }
 0x284   :  { %v905_v43 = vmul.f32 0.125, %v892_v38 }
 0x285   :  { %v906_v44 = vmul.f32 0.125, %v898_v41 }
 0x286   :  { %v908_v45 = vsub.f32 %v1298_v22, %v905_v43 }
 0x287   :  { %v909_v47 = vsub.f32 %v1299_v27, %v906_v44  ;;  %v1320_v4 = vpop.eup %1319 }
 0x288   :  { %v911_v48 = vmul.f32 %v908_v45, %v908_v45  ;;  %v943_v7 = vmul.f32 %v1320_v4, %v910_v16  ;;  %v80_v16 = vld [vmem:[#allocation7 + $0x6] ss:$8 sm:$0x7] }
 0x289   :  { %v912_v49 = vmul.f32 %v909_v47, %v909_v47  ;;  %v989_v27 = vrot.slane %v80_v16, %v1503_v50  ;;  %v993_v29 = vrot.slane %v80_v16, %v1505_v52  ;;  %v997_v32 = vrot.slane %v80_v16, %v1509_v58 }
 0x28a   :  { %v914_v51 = vrot.slane %v911_v48, 4  ;;  %v962_v14 = vmul.f32 %v956_v9, %v943_v7 }
 0x28b   :  { %v920_v54 = vrot.slane %v912_v49, 4 }
 0x28c   :  { %v915_v55 = vadd.f32 %v914_v51, %v911_v48  ;;  %v981_v24 = vadd.f32 %v975_v8, %v962_v14 }
 0x28d   :  { %v921_v56 = vadd.f32 %v920_v54, %v912_v49 }
 0x28e   :  { %v916_v57 = vrot.slane %v915_v55, 2  ;;  %v984_v23 = vmax.f32 %v981_v24, 0.0 }
 0x28f   :  { %v922_v61 = vrot.slane %v921_v56, 2 }
 0x290   :  { %v917_v42 = vadd.f32 %v916_v57, %v915_v55  ;;  %v1003_v25 = vmul.f32 %v997_v32, %v984_v23 }
 0x291   :  { %v923_v62 = vadd.f32 %v922_v61, %v921_v56 }
 0x292   :  { %v918_v63 = vrot.slane %v917_v42, 1 }
 0x293   :  { %v924_v5 = vrot.slane %v923_v62, 1 }
 0x294   :  { %v919_v0 = vadd.f32 %v918_v63, %v917_v42 }
 0x295   :  { %v925_v1 = vadd.f32 %v924_v5, %v923_v62 }
 0x296   :  { %v932_v2 = vmul.f32 0.125, %v919_v0 }
 0x297   :  { %v933_v3 = vmul.f32 0.125, %v925_v1 }
 0x298   :  { %v935_v40 = vadd.f32 1e-05, %v932_v2 }
 0x299   :  { %v936_v60 = vadd.f32 1e-05, %v933_v3 }
 0x29a   :  { %1321 = vrsqrt.f32 %v935_v40 }
 0x29b   :  { %1323 = vrsqrt.f32 %v936_v60 }
 0x2a4   :  { %v1322_v12 = vpop.eup %1321 }
 0x2a5   :  { %v1324_v15 = vpop.eup %1323  ;;  %v941_v17 = vmul.f32 %v1322_v12, %v908_v45 }
 0x2a6   :  { %v942_v19 = vmul.f32 %v1324_v15, %v909_v47 }
 0x2a7   :  { %v960_v21 = vmul.f32 %v948_v11, %v941_v17 }
 0x2a8   :  { %v961_v22 = vmul.f32 %v952_v13, %v942_v19 }
 0x2a9   :  { %v979_v26 = vadd.f32 %v967_v18, %v960_v21 }
 0x2aa   :  { %v980_v28 = vadd.f32 %v971_v20, %v961_v22 }
 0x2ab   :  { %v982_v30 = vmax.f32 %v979_v26, 0.0 }
 0x2ac   :  { %v983_v31 = vmax.f32 %v980_v28, 0.0 }
 0x2ad   :  { %v1001_v33 = vmul.f32 %v989_v27, %v982_v30 }
 0x2ae   :  { %v1002_v34 = vmul.f32 %v993_v29, %v983_v31 }
 0x2b0   :  { %v1004_v35 = vadd.f32 %v1002_v34, %v1001_v33 }
 0x2b2   :  { %v1005_v36 = vadd.f32 %v1004_v35, %v1003_v25 }
 0x2b4   :  { %1006 = vadd.xlane.f32.xlu0 %v1005_v36 }
 0x341   :  { %v1007_v38 = vpop.xlane.xlu0 %1006 }
 0x342   :  { %v1008_v39 = vadd.f32 %v1007_v38, %v81_v37 }
 0x344   :  { %1010 = vst.msk [vmem:[%s1567_s4] sm:$0xff] %vm1009_vm1, %v1008_v39 }
 0x345   :  { %1015 = vsyncpa [#allocation3], 1 }
 0x346   :  { %1016 = vsyncpa [#allocation5], 1 }
 0x347   :  { %1017 = vsyncpa [#allocation8], 1 }

</bundles_post_ra>
